<compile_context>
chip_gen: v5e
topology: v5e:2x2
jax: 0.10.0
libtpu: 0.0.40
codegen_flags: <defaults>
</compile_context>

<pallas_src>
import functools

import jax
import jax.numpy as jnp
from jax.experimental import pallas as pl
from jax.experimental.pallas import tpu as pltpu

LANE = 128


def _round_up(x, m):
    return (x + m - 1) // m * m


def _bigram_kernel(ids_ref, table_ref, logits_ref, *rest,
                   n_valid, n_classes, compute_loss):
    # ids_ref:    (TN, 2)   int32   VMEM  (col 0 = idx, col 1 = targets)
    # table_ref:  (P, P)    float32 VMEM  (zero-padded embedding table)
    # logits_ref: (TN, P)   float32 VMEM  (lane-dense, padded classes)
    # rest:       (loss_ref,) if compute_loss, loss_ref is (1, 1) f32 SMEM
    tn = ids_ref.shape[0]
    cp = table_ref.shape[1]

    ids = ids_ref[...]                                            # (TN, 2)
    idx = ids[:, 0:1]                                             # (TN, 1)

    # One lane-iota reused for embedding one-hot, class mask and target gather
    # (V == C for the bigram model, so vocab iota == class iota).
    lane_iota = jax.lax.broadcasted_iota(jnp.int32, (tn, cp), 1)  # (TN, P)

    # Embedding lookup as a lane-dense one-hot matmul on the MXU.
    one_hot = (lane_iota == idx).astype(table_ref.dtype)          # (TN, P)
    logits = jnp.dot(one_hot, table_ref[...],
                     preferred_element_type=jnp.float32)          # (TN, P)
    logits_ref[...] = logits.astype(logits_ref.dtype)             # dense vst

    if compute_loss:
        loss_ref = rest[0]
        i = pl.program_id(0)
        tgt = ids[:, 1:2]                                         # (TN, 1)

        # Padded class lanes must not contribute to the log-sum-exp.
        class_valid = lane_iota < n_classes
        masked = jnp.where(class_valid, logits, -jnp.inf)         # (TN, P)
        m = jnp.max(masked, axis=-1, keepdims=True)               # (TN, 1)
        lse = m + jnp.log(jnp.sum(jnp.exp(masked - m),
                                  axis=-1, keepdims=True))        # (TN, 1)

        # Target logit via masked select + reduce (no second f32 one-hot).
        tgt_logit = jnp.sum(jnp.where(lane_iota == tgt, logits, 0.0),
                            axis=-1, keepdims=True)               # (TN, 1)
        per_row = lse - tgt_logit                                 # (TN, 1)

        # Mask rows added by rounding N up to a tile multiple.
        row = jax.lax.broadcasted_iota(jnp.int32, (tn, 1), 0) + i * tn
        per_row = jnp.where(row < n_valid, per_row, 0.0)

        @pl.when(i == 0)
        def _init():
            loss_ref[0, 0] = 0.0

        loss_ref[0, 0] += jnp.sum(per_row)

        @pl.when(i == pl.num_programs(0) - 1)
        def _finalize():
            loss_ref[0, 0] = loss_ref[0, 0] / n_valid


def bigram_forward(idx, targets, table, *, compute_loss=False, tn=None):
    """Forward pass. Returns logits (B*T, C); (logits, loss) if compute_loss."""
    B, T = idx.shape
    V, C = table.shape
    assert V == C, "bigram LM: embedding width must equal vocab size"
    N = B * T

    # Pad vocab/class dims to the 128-lane width (lane-dense MXU + stores).
    P = _round_up(max(V, C), LANE)
    table_p = jnp.pad(table.astype(jnp.float32), ((0, P - V), (0, P - C)))

    # Merge idx/targets into a single small int32 input.
    ids = jnp.stack([idx.reshape(N).astype(jnp.int32),
                     targets.reshape(N).astype(jnp.int32)], axis=1)  # (N, 2)

    # Token-dim tile: 8-sublane aligned for tiny N, 256 rows when scaling
    # (fills a v6e/v7x MXU pass; still fine on v5e).
    if tn is None:
        tn = _round_up(N, 8) if N <= 256 else 256
    n_pad = _round_up(N, tn)
    if n_pad != N:
        ids = jnp.pad(ids, ((0, n_pad - N), (0, 0)))
    grid = (n_pad // tn,)

    kernel = functools.partial(_bigram_kernel, n_valid=N, n_classes=C,
                               compute_loss=compute_loss)

    out_shape = [jax.ShapeDtypeStruct((n_pad, P), jnp.float32)]
    out_specs = [pl.BlockSpec((tn, P), lambda i: (i, 0))]
    if compute_loss:
        out_shape.append(jax.ShapeDtypeStruct((1, 1), jnp.float32))
        out_specs.append(pl.BlockSpec((1, 1), lambda i: (0, 0),
                                      memory_space=pltpu.MemorySpace.SMEM))

    out = pl.pallas_call(
        kernel,
        out_shape=tuple(out_shape),
        grid=grid,
        in_specs=[
            pl.BlockSpec((tn, 2), lambda i: (i, 0)),
            # Constant block index: table DMA'd into VMEM once, stays resident.
            pl.BlockSpec((P, P), lambda i: (0, 0)),
        ],
        out_specs=tuple(out_specs),
        compiler_params=pltpu.CompilerParams(
            dimension_semantics=("arbitrary" if compute_loss else "parallel",)),
    )(ids, table_p)

    if compute_loss:
        logits_p, loss = out
        return logits_p[:N, :C], loss[0, 0]
    (logits_p,) = out
    return logits_p[:N, :C]


def _reference(idx, targets, table):
    logits = jnp.take(table, idx.reshape(-1), axis=0)             # (B*T, C)
    lse = jax.scipy.special.logsumexp(logits, axis=-1)
    tgt_logit = jnp.take_along_axis(
        logits, targets.reshape(-1, 1), axis=-1)[:, 0]
    loss = jnp.mean(lse - tgt_logit)
    return logits, loss


if __name__ == "__main__":
    # Small, deterministic setup: vocab=65 (char-level), batch=2, seq=8.
    vocab_size = 65
    B, T = 2, 8

    key = jax.random.PRNGKey(0)
    k_table, k_idx, k_tgt = jax.random.split(key, 3)

    # nn.Embedding(vocab_size, vocab_size) default init ~ N(0, 1).
    table = jax.random.normal(k_table, (vocab_size, vocab_size),
                              dtype=jnp.float32)
    idx = jax.random.randint(k_idx, (B, T), 0, vocab_size, dtype=jnp.int32)
    targets = jax.random.randint(k_tgt, (B, T), 0, vocab_size,
                                 dtype=jnp.int32)

    # Production path: matches the PyTorch module's observable output
    # (logits only; the reference's loss is discarded, so we skip it).
    logits = bigram_forward(idx, targets, table, compute_loss=False)
    jax.block_until_ready(logits)

    # Checked path with the fused cross-entropy enabled.
    logits_l, loss = bigram_forward(idx, targets, table, compute_loss=True)
    jax.block_until_ready(logits_l)
    jax.block_until_ready(loss)

    ref_logits, ref_loss = _reference(idx, targets, table)
    assert logits.shape == (B * T, vocab_size)
    assert jnp.allclose(logits, ref_logits, atol=1e-5, rtol=1e-5)
    assert jnp.allclose(logits_l, ref_logits, atol=1e-5, rtol=1e-5)
    assert jnp.allclose(loss, ref_loss, atol=1e-5, rtol=1e-5)

    print("KERNEL_OK")
</pallas_src>

<mosaic_0001>
module attributes {stable_mosaic.version = 11 : i64} {
  func.func @_bigram_kernel(%arg0: i32, %arg1: memref<16x2xi32, #tpu.memory_space<vmem>>, %arg2: memref<128x128xf32, #tpu.memory_space<vmem>>, %arg3: memref<16x128xf32, #tpu.memory_space<vmem>>) attributes {dimension_semantics = [#tpu.dimension_semantics<parallel>], iteration_bounds = array<i64: 1>, scalar_prefetch = 0 : i64, scratch_operands = 0 : i64, tpu.core_type = #tpu.core_type<tc>, window_params = [{transform_indices = @transform_0, window_bounds = array<i64: 16, 2>}, {pipeline_mode = #tpu.pipeline_mode<synchronous>, transform_indices = @transform_1, window_bounds = array<i64: 128, 128>}, {transform_indices = @transform_2, window_bounds = array<i64: 16, 128>}]} {
    %c0 = arith.constant 0 : index
    %c0_0 = arith.constant 0 : index
    %0 = vector.load %arg1[%c0, %c0_0] : memref<16x2xi32, #tpu.memory_space<vmem>>, vector<16x2xi32>
    %1 = vector.extract_strided_slice %0 {offsets = [0, 0], sizes = [16, 1], strides = [1, 1]} : vector<16x2xi32> to vector<16x1xi32>
    %2 = tpu.iota {dimensions = array<i32: 1>} : vector<16x128xi32>
    %3 = vector.broadcast %1 : vector<16x1xi32> to vector<16x128xi32>
    %4 = arith.cmpi eq, %2, %3 : vector<16x128xi32>
    %5 = arith.extui %4 : vector<16x128xi1> to vector<16x128xi32>
    %6 = arith.sitofp %5 : vector<16x128xi32> to vector<16x128xf32>
    %c0_1 = arith.constant 0 : index
    %c0_2 = arith.constant 0 : index
    %7 = vector.load %arg2[%c0_1, %c0_2] : memref<128x128xf32, #tpu.memory_space<vmem>>, vector<128x128xf32>
    %cst = arith.constant dense<0.000000e+00> : vector<16x128xf32>
    %8 = tpu.matmul %6, %7, %cst {dimension_numbers = #tpu.dot_dimension_numbers<[1], [0], [0], [1], [0, 0, 1, 1], [], []>} : vector<16x128xf32>, vector<128x128xf32>, vector<16x128xf32> -> vector<16x128xf32>
    %c0_3 = arith.constant 0 : index
    %c0_4 = arith.constant 0 : index
    %9 = vector.load %arg3[%c0_3, %c0_4] : memref<16x128xf32, #tpu.memory_space<vmem>>, vector<16x128xf32>
    tpu.vector_store %arg3[%c0_3, %c0_4], %8 {strides = array<i32>} : memref<16x128xf32, #tpu.memory_space<vmem>>, vector<16x128xf32>,
    return
  }
  func.func @transform_0(%arg0: i32) -> (i32, i32) {
    %c0_i32 = arith.constant 0 : i32
    %c0_i32_0 = arith.constant 0 : i32
    return %arg0, %c0_i32 : i32, i32
  }
  func.func @transform_1(%arg0: i32) -> (i32, i32) {
    %c0_i32 = arith.constant 0 : i32
    %c0_i32_0 = arith.constant 0 : i32
    %c0_i32_1 = arith.constant 0 : i32
    return %c0_i32, %c0_i32_0 : i32, i32
  }
  func.func @transform_2(%arg0: i32) -> (i32, i32) {
    %c0_i32 = arith.constant 0 : i32
    %c0_i32_0 = arith.constant 0 : i32
    return %arg0, %c0_i32 : i32, i32
  }
}

</mosaic_0001>

<bundles_post_ra>
// kernel: tpu_custom_call.1
= control target key start
LH: loop header
LB: loop body
LE: loop exit
PB: predicated region body
PF: predicated region fallthrough
CT: control target
= control target key end

     0   :  { %7 = vsyncpa [#allocation3], 0  ;;  %s222_s0 = inlined_call_operand.vmem [shape: s32[16,2], index: 0, kind: input, shape index: {}]   ;;  %s223_s1 = inlined_call_operand.hbm [shape: f32[128,128], index: 1, kind: input, shape index: {}]   ;;  %s224_s2 = inlined_call_operand.hbm [shape: f32[16,128], index: 2, kind: output, shape index: {}]  }
   0x1   :  { %8 = vsyncpa [#allocation4], 0  ;;  %s15_s11 = sshll.u32 %s223_s1, 4  ;;  %s183_s12 = smov [#allocation2]   ;;  %s16_s11 = int_to_ptr.hbm [resolvable:$true] %s15_s11 }
   0x2   :  { %s17_s13 = sshll.u32 %s183_s12, 4  ;;  %s184_s14 = smov 128   ;;  %s18_s13 = int_to_ptr.vmem [resolvable:$true] %s17_s13 }
   0x3   :  { %s185_s15 = smov 8  }
   0x4   :  { %23 = dma.hbm_to_vmem [thread:$0]  %s16_s11, 2048, %s18_s13, [#allocation3], %s184_s14, %s184_s14, %s185_s15  }
   0x5   :  { %179 = dma.done.wait [#allocation3], 2048  }
   0x6   :  { %180 = vsyncadd [#allocation3], 4294965248  ;;  %v186_v0 = vmov 0   ;;  %v28_v1 = vld [vmem:[%s222_s0] sm:$0xff]  ;;  %v59_v2 = vld [vmem:[#allocation2 + $0x78] sm:$0xff]  ;;  %v30_v19 = vlaneseq  ;;  %v187_v22 = vmov 1.0  }
   0x7   :  { %130 = vset.pattern.permute.xlu0 %v186_v0  ;;  %60 = vmatpush.msra.mxu0 %v59_v2  ;;  %v58_v3 = vld [vmem:[#allocation2 + $0x70] sm:$0xff]  ;;  %v57_v4 = vld [vmem:[#allocation2 + $0x68] sm:$0xff]  ;;  %v56_v5 = vld [vmem:[#allocation2 + $0x60] sm:$0xff]  ;;  %s91_s22 = sshll.u32 %s224_s2, 4  ;;  %s92_s22 = int_to_ptr.hbm [resolvable:$true] %s91_s22 }
   0x8   :  { %33 = vperm.xlu0 %130, %v28_v1   ;;  %108 = vmatpush.msra.mxu1 %v59_v2  ;;  %v29_v6 = vld [vmem:[%s222_s0 + $0x8] sm:$0xff]  ;;  %v55_v7 = vld [vmem:[#allocation2 + $0x58] sm:$0xff]  ;;  %v54_v8 = vld [vmem:[#allocation2 + $0x50] sm:$0xff]  ;;  %v31_v20 = vand.u32 127, %v30_v19  ;;  %s188_s0 = smov [#allocation5]  }
   0x9   :  { %61 = vmatpush.msra.mxu0 %v58_v3  ;;  %v53_v9 = vld [vmem:[#allocation2 + $0x48] sm:$0xff]  ;;  %v52_v10 = vld [vmem:[#allocation2 + $0x40] sm:$0xff]  ;;  %v51_v11 = vld [vmem:[#allocation2 + $0x38] sm:$0xff]  ;;  %s89_s19 = sshll.u32 %s188_s0, 4  ;;  %s90_s19 = int_to_ptr.vmem [resolvable:$true] %s89_s19 }
   0xa   :  { %109 = vmatpush.msra.mxu1 %v58_v3  ;;  %v50_v12 = vld [vmem:[#allocation2 + $0x30] sm:$0xff]  ;;  %v49_v13 = vld [vmem:[#allocation2 + $0x28] sm:$0xff]  ;;  %v48_v14 = vld [vmem:[#allocation2 + $0x20] sm:$0xff] }
   0xb   :  { %62 = vmatpush.msra.mxu0 %v57_v4  ;;  %v47_v15 = vld [vmem:[#allocation2 + $0x18] sm:$0xff]  ;;  %v46_v16 = vld [vmem:[#allocation2 + $0x10] sm:$0xff]  ;;  %v45_v17 = vld [vmem:[#allocation2 + $0x8] sm:$0xff] }
   0xc   :  { %110 = vmatpush.msra.mxu1 %v57_v4  ;;  %v44_v18 = vld [vmem:[#allocation2] sm:$0xff] }
   0xd   :  { %63 = vmatpush.msra.mxu0 %v56_v5 }
   0xe   :  { %111 = vmatpush.msra.mxu1 %v56_v5 }
   0xf   :  { %64 = vmatpush.msra.mxu0 %v55_v7 }
  0x10   :  { %36 = vperm.xlu0 %130, %v29_v6   ;;  %112 = vmatpush.msra.mxu1 %v55_v7 }
  0x11   :  { %65 = vmatpush.msra.mxu0 %v54_v8 }
  0x12   :  { %113 = vmatpush.msra.mxu1 %v54_v8 }
  0x13   :  { %66 = vmatpush.msra.mxu0 %v53_v9 }
  0x14   :  { %114 = vmatpush.msra.mxu1 %v53_v9 }
  0x15   :  { %67 = vmatpush.msra.mxu0 %v52_v10 }
  0x16   :  { %115 = vmatpush.msra.mxu1 %v52_v10 }
  0x17   :  { %68 = vmatpush.msra.mxu0 %v51_v11 }
  0x18   :  { %116 = vmatpush.msra.mxu1 %v51_v11 }
  0x19   :  { %69 = vmatpush.msra.mxu0 %v50_v12 }
  0x1a   :  { %117 = vmatpush.msra.mxu1 %v50_v12 }
  0x1b   :  { %70 = vmatpush.msra.mxu0 %v49_v13 }
  0x1c   :  { %118 = vmatpush.msra.mxu1 %v49_v13 }
  0x1d   :  { %71 = vmatpush.msra.mxu0 %v48_v14 }
  0x1e   :  { %119 = vmatpush.msra.mxu1 %v48_v14 }
  0x1f   :  { %72 = vmatpush.msra.mxu0 %v47_v15 }
  0x20   :  { %120 = vmatpush.msra.mxu1 %v47_v15 }
  0x21   :  { %73 = vmatpush.msra.mxu0 %v46_v16 }
  0x22   :  { %121 = vmatpush.msra.mxu1 %v46_v16 }
  0x23   :  { %74 = vmatpush.msra.mxu0 %v45_v17 }
  0x24   :  { %122 = vmatpush.msra.mxu1 %v45_v17 }
  0x25   :  { %75 = vmatpush.msra.mxu0 %v44_v18 }
  0x26   :  { %123 = vmatpush.msra.mxu1 %v44_v18 }
  0x7a   :  { %v34_v21 = vpop.permute.xlu0 %33 }
  0x7b   :  { %vm38_vm0 = vcmp.eq.s32.totalorder %v31_v20, %v34_v21 }
  0x7c   :  { %106 = vmatmul.msk.f32.vlgmr.msra.gmra.mxu0 %vm38_vm0, %v187_v22 }
  0x82   :  { %v37_v23 = vpop.permute.xlu0 %36 }
  0x83   :  { %vm39_vm1 = vcmp.eq.s32.totalorder %v31_v20, %v37_v23 }
  0x84   :  { %107 = vmatmul.msk.f32.vlgmr.msra.gmra.mxu1 %vm39_vm1, %v187_v22 }
  0xf9   :  { %v77_v24 = vpop.f32.mrf.mxu0 }
  0xfa   :  { %83 = vst [vmem:[#allocation5] sm:$0xff] %v77_v24 }
 0x101   :  { %v80_v25 = vpop.f32.mrf.mxu1 }
 0x102   :  { %84 = vst [vmem:[#allocation5 + $0x8] sm:$0xff] %v80_v25 }
 0x103   :  { %97 = dma.vmem_to_hbm [thread:$0]  %s90_s19, 256, %s92_s22, [#allocation4], %s184_s14, %s184_s14, %s185_s15  }
 0x104   :  { %181 = dma.done.wait [#allocation4], 256  }
 0x105   :  { %182 = vsyncadd [#allocation4], 4294967040 }
 0x106   :  { %102 = vsyncpa [#allocation3], 1 }
 0x107   :  { %103 = vsyncpa [#allocation4], 1 }

</bundles_post_ra>
